<compile_context>
chip_gen: v7x
topology: tpu7x:2x2x1
jax: 0.10.0
libtpu: 0.0.40
codegen_flags: <defaults>
</compile_context>

<pallas_src>
import functools
import math

import jax
import jax.numpy as jnp
from jax import lax
from jax.experimental import pallas as pl
from jax.experimental.pallas import tpu as pltpu


# Large finite negative used for masked logits: avoids exp(-inf - -inf) = NaN when a
# query row is fully masked within a single kv tile (later tiles still recover).
_MASK_MIN = -1e30


# ----------------------------------------------------------------------------
# hardware helpers
# ----------------------------------------------------------------------------
@functools.lru_cache(maxsize=None)
def _tpu_generation():
    """Best-effort TPU generation (5, 6, 7, ...); 0 if unknown."""
    try:
        kind = jax.devices()[0].device_kind.lower()
    except Exception:
        return 0
    for gen in (7, 6, 5, 4, 3, 2):
        if f"v{gen}" in kind or f"tpu{gen}" in kind:
            return gen
    return 0


@functools.lru_cache(maxsize=None)
def _vmem_limit_bytes():
    """Scoped VMEM limit with headroom: ~48 MiB on v7x (64 MiB physical),
    ~96 MiB on v5e/v6e (128 MiB physical)."""
    try:
        cap = int(pltpu.get_tpu_info().vmem_capacity_bytes)
        return min((cap * 3) // 4, 100 * 1024 * 1024)
    except Exception:
        pass
    gen = _tpu_generation()
    if gen in (5, 6):
        return 96 * 1024 * 1024
    return 48 * 1024 * 1024          # v7x-safe default (also used when unknown)


# ----------------------------------------------------------------------------
# tiling helper
# ----------------------------------------------------------------------------
def _pick_tile(dim, cap, aligns):
    """Largest tile <= cap dividing `dim` that is a multiple of one of `aligns`
    (tried in order); `dim` itself if dim <= cap; otherwise the full dim."""
    if dim <= cap:
        return dim
    for align in aligns:
        t = (cap // align) * align
        while t >= align:
            if dim % t == 0:
                return t
            t -= align
    # TODO(synk): pad to a cdiv grid with masked epilogue stores for pathological
    # dims instead of falling back to a full-extent block.
    return dim


# ----------------------------------------------------------------------------
# Tiled linear:  y = x @ W.T + b     (x cast to compute dtype inside the kernel)
# ----------------------------------------------------------------------------
def _linear_kernel(x_ref, w_ref, b_ref, o_ref, acc_ref, *, compute_dtype):
    # x_ref: (tm, tk) input dtype; w_ref: (tn, tk) compute dtype; b_ref: (1, tn) f32
    @pl.when(pl.program_id(2) == 0)
    def _():
        acc_ref[...] = jnp.zeros(acc_ref.shape, jnp.float32)

    x = x_ref[...].astype(compute_dtype)       # cast in VMEM: no extra HBM pass
    acc_ref[...] += lax.dot_general(
        x, w_ref[...], (((1,), (1,)), ((), ())),
        preferred_element_type=jnp.float32)

    @pl.when(pl.program_id(2) == pl.num_programs(2) - 1)
    def _():
        o_ref[...] = (acc_ref[...] + b_ref[...]).astype(o_ref.dtype)


def _linear(x, w, b, *, compute_dtype, out_dtype):
    """x: (M, K) any float dtype, w: (n_out, K) compute dtype, b: (n_out,) f32."""
    M, K = x.shape
    n_out = w.shape[0]
    tm = _pick_tile(M, 512, (256, 128, 8))
    tn = _pick_tile(n_out, 512, (256, 128))
    tk = _pick_tile(K, 1024, (256, 128))
    grid = (M // tm, n_out // tn, K // tk)
    b2 = b.reshape(1, n_out).astype(jnp.float32)

    kernel = functools.partial(_linear_kernel, compute_dtype=compute_dtype)
    return pl.pallas_call(
        kernel,
        out_shape=jax.ShapeDtypeStruct((M, n_out), out_dtype),
        grid_spec=pltpu.PrefetchScalarGridSpec(
            num_scalar_prefetch=0,
            grid=grid,
            in_specs=[
                pl.BlockSpec((tm, tk), lambda i, j, k: (i, k)),
                pl.BlockSpec((tn, tk), lambda i, j, k: (j, k)),
                pl.BlockSpec((1, tn), lambda i, j, k: (0, j)),
            ],
            out_specs=pl.BlockSpec((tm, tn), lambda i, j, k: (i, j)),
            scratch_shapes=[pltpu.VMEM((tm, tn), jnp.float32)],
        ),
        compiler_params=pltpu.CompilerParams(
            dimension_semantics=("parallel", "parallel", "arbitrary"),
            vmem_limit_bytes=_vmem_limit_bytes(),
        ),
    )(x, w, b2)


# ----------------------------------------------------------------------------
# Flash-attention over the (seq, batch, head, Dh) layout (no wrapper transposes)
# ----------------------------------------------------------------------------
def _flash_attn_kernel(*refs, exp_dtype, approx_recip, has_mask):
    if has_mask:
        q_ref, k_ref, v_ref, mask_ref, o_ref, m_sc, l_sc, acc_sc = refs
    else:
        q_ref, k_ref, v_ref, o_ref, m_sc, l_sc, acc_sc = refs
        mask_ref = None

    ki = pl.program_id(2)
    n_head = q_ref.shape[2]

    @pl.when(ki == 0)
    def _():
        m_sc[...] = jnp.full(m_sc.shape, -jnp.inf, jnp.float32)
        l_sc[...] = jnp.zeros(l_sc.shape, jnp.float32)
        acc_sc[...] = jnp.zeros(acc_sc.shape, jnp.float32)

    mask = mask_ref[...].astype(jnp.float32) if has_mask else None   # (tq, tk)

    # Unrolled static loop over heads: clean 2-D MXU matmuls per head, per-head
    # online-softmax state in f32 scratch.  The 1/sqrt(Dh) scale is pre-folded
    # into the q projection weights, so there is no per-step scaling here.
    for h in range(n_head):
        q = q_ref[:, 0, h, :]                                        # (tq, Dh)
        k = k_ref[:, 0, h, :]                                        # (tk, Dh)
        v = v_ref[:, 0, h, :]                                        # (tk, Dh)
        s = lax.dot_general(q, k, (((1,), (1,)), ((), ())),
                            preferred_element_type=jnp.float32)      # (tq, tk)
        if has_mask:
            s = s + mask
        m_prev = m_sc[h]                                             # (tq, 1)
        m_new = jnp.maximum(m_prev, s.max(axis=-1, keepdims=True))
        alpha = jnp.exp(m_prev - m_new)
        # exp in bf16 on v6e/v7x (bf16 EUP path); accumulation stays in f32
        p = jnp.exp((s - m_new).astype(exp_dtype))
        l_sc[h] = alpha * l_sc[h] + p.astype(jnp.float32).sum(axis=-1, keepdims=True)
        acc_sc[h] = alpha * acc_sc[h] + lax.dot_general(
            p.astype(v.dtype), v, (((1,), (0,)), ((), ())),
            preferred_element_type=jnp.float32)
        m_sc[h] = m_new

    @pl.when(ki == pl.num_programs(2) - 1)
    def _():
        for h in range(n_head):
            inv_l = pl.reciprocal(l_sc[h], approx=approx_recip)
            o_ref[:, 0, h, :] = (acc_sc[h] * inv_l).astype(o_ref.dtype)


def _flash_attention(q, k, v, mask, *, exp_dtype, approx_recip):
    # q: (L, N, H, Dh), k/v: (S, N, H, Dh), mask: (L, S) or None -> (L, N, H, Dh)
    L, N, H, Dh = q.shape
    S = k.shape[0]
    tq = _pick_tile(L, 256, (256, 128, 8))
    tk = _pick_tile(S, 512, (256, 128))
    grid = (N, L // tq, S // tk)
    has_mask = mask is not None

    kernel = functools.partial(_flash_attn_kernel, exp_dtype=exp_dtype,
                               approx_recip=approx_recip, has_mask=has_mask)

    in_specs = [
        pl.BlockSpec((tq, 1, H, Dh), lambda n, qi, ki: (qi, n, 0, 0)),
        pl.BlockSpec((tk, 1, H, Dh), lambda n, qi, ki: (ki, n, 0, 0)),
        pl.BlockSpec((tk, 1, H, Dh), lambda n, qi, ki: (ki, n, 0, 0)),
    ]
    args = [q, k, v]
    if has_mask:
        in_specs.append(pl.BlockSpec((tq, tk), lambda n, qi, ki: (qi, ki)))
        args.append(mask)

    return pl.pallas_call(
        kernel,
        out_shape=jax.ShapeDtypeStruct((L, N, H, Dh), q.dtype),
        grid_spec=pltpu.PrefetchScalarGridSpec(
            num_scalar_prefetch=0,
            grid=grid,
            in_specs=in_specs,
            out_specs=pl.BlockSpec((tq, 1, H, Dh), lambda n, qi, ki: (qi, n, 0, 0)),
            scratch_shapes=[
                pltpu.VMEM((H, tq, 1), jnp.float32),    # running max m
                pltpu.VMEM((H, tq, 1), jnp.float32),    # running denom l
                pltpu.VMEM((H, tq, Dh), jnp.float32),   # output accumulator
            ],
        ),
        compiler_params=pltpu.CompilerParams(
            dimension_semantics=("parallel", "parallel", "arbitrary"),
            vmem_limit_bytes=_vmem_limit_bytes(),
        ),
    )(*args)


# ----------------------------------------------------------------------------
# SparseAttention forward (== nn.MultiheadAttention(query, key, value, mask)[0])
# ----------------------------------------------------------------------------
def sparse_attention_forward(params, query, key, value, attn_mask=None, *,
                             n_head, compute_dtype=jnp.bfloat16):
    """query: (L, N, E), key/value: (S, N, E); returns (L, N, E) float32."""
    w_in, b_in, w_out, b_out = params
    L, N, E = query.shape
    S = key.shape[0]
    H = n_head
    Dh = E // H
    scale = 1.0 / math.sqrt(Dh)
    cdt = jnp.dtype(compute_dtype)
    is_f32 = cdt == jnp.dtype(jnp.float32)
    approx_recip = not is_f32
    # bf16 exp uses the v6e/v7x bf16 EUP path; v5e has no bf16 EUP -> keep f32 there.
    exp_dtype = cdt if (not is_f32 and _tpu_generation() >= 6) else jnp.float32

    # Fold 1/sqrt(Dh) into the q projection (weights are tiny); removes the per-step
    # q*scale multiply from the attention inner loop entirely.
    w_q = (w_in[:E] * scale).astype(cdt)
    b_q = b_in[:E] * scale
    w_k = w_in[E:2 * E].astype(cdt)
    w_v = w_in[2 * E:].astype(cdt)

    # --- in-projections: three tiled GEMMs (no jnp.stack), f32 inputs cast in-kernel ---
    q = _linear(query.reshape(L * N, E), w_q, b_q, compute_dtype=cdt, out_dtype=cdt)
    k = _linear(key.reshape(S * N, E), w_k, b_in[E:2 * E], compute_dtype=cdt,
                out_dtype=cdt)
    v = _linear(value.reshape(S * N, E), w_v, b_in[2 * E:], compute_dtype=cdt,
                out_dtype=cdt)

    # Free row-major views: (L*N, E) == (L, N, H, Dh).  The attention kernel's
    # BlockSpecs index this layout directly, so no head split/merge transposes.
    q4 = q.reshape(L, N, H, Dh)
    k4 = k.reshape(S, N, H, Dh)
    v4 = v.reshape(S, N, H, Dh)

    # --- additive (L, S) mask in compute dtype (halves mask DMA on the bf16 path) ---
    if attn_mask is None:
        mask = None
    elif attn_mask.dtype == jnp.bool_:
        # PyTorch semantics: True == "do not attend".  Large finite negative instead
        # of -inf so a row fully masked within one kv tile cannot NaN-poison m/l/acc.
        mask = jnp.where(attn_mask, _MASK_MIN, 0.0).astype(cdt)
    else:
        mask = jnp.maximum(attn_mask.astype(jnp.float32), _MASK_MIN).astype(cdt)
    # TODO(synk): structured (causal/banded) masks could be generated in-kernel from
    # broadcasted_iota instead of streaming an (L, S) array once per batch element.

    attn = _flash_attention(q4, k4, v4, mask, exp_dtype=exp_dtype,
                            approx_recip=approx_recip)               # (L, N, H, Dh)

    # --- out-projection: (L*N, E) @ w_out.T + b_out, f32 output ---
    out = _linear(attn.reshape(L * N, E), w_out.astype(cdt), b_out,
                  compute_dtype=cdt, out_dtype=jnp.float32)
    return out.reshape(L, N, E)


def init_params(rng, hidden_size):
    E = hidden_size
    k1, k2 = jax.random.split(rng)
    bound_in = (6.0 / (E + 3 * E)) ** 0.5
    w_in = jax.random.uniform(k1, (3 * E, E), jnp.float32, -bound_in, bound_in)
    b_in = jnp.zeros((3 * E,), jnp.float32)
    bound_out = (1.0 / E) ** 0.5
    w_out = jax.random.uniform(k2, (E, E), jnp.float32, -bound_out, bound_out)
    b_out = jnp.zeros((E,), jnp.float32)
    return w_in, b_in, w_out, b_out


# ----------------------------------------------------------------------------
def _reference(params, query, key, value, attn_mask, n_head):
    # Pure-JAX f32 reference (matches PyTorch nn.MultiheadAttention math).
    w_in, b_in, w_out, b_out = params
    L, N, E = query.shape
    S = key.shape[0]
    H, Dh = n_head, E // n_head
    q = query.reshape(L * N, E) @ w_in[:E].T + b_in[:E]
    k = key.reshape(S * N, E) @ w_in[E:2 * E].T + b_in[E:2 * E]
    v = value.reshape(S * N, E) @ w_in[2 * E:].T + b_in[2 * E:]
    q = q.reshape(L, N, H, Dh).transpose(1, 2, 0, 3)
    k = k.reshape(S, N, H, Dh).transpose(1, 2, 0, 3)
    v = v.reshape(S, N, H, Dh).transpose(1, 2, 0, 3)
    scores = jnp.einsum("nhld,nhsd->nhls", q, k) / (Dh ** 0.5)
    if attn_mask is not None:
        if attn_mask.dtype == jnp.bool_:
            attn_mask = jnp.where(attn_mask, -jnp.inf, 0.0)
        scores = scores + attn_mask
    p = jax.nn.softmax(scores, axis=-1)
    attn = jnp.einsum("nhls,nhsd->nhld", p, v)
    attn = attn.transpose(2, 0, 1, 3).reshape(L * N, E)
    out = attn @ w_out.T + b_out
    return out.reshape(L, N, E)


if __name__ == "__main__":
    hidden_size = 32
    n_head = 4
    L = S = 8
    N = 2  # batch

    root = jax.random.PRNGKey(0)
    kp, kq, kk, kv, km, kb = jax.random.split(root, 6)

    params = init_params(kp, hidden_size)
    query = jax.random.normal(kq, (L, N, hidden_size), jnp.float32)
    key = jax.random.normal(kk, (S, N, hidden_size), jnp.float32)
    value = jax.random.normal(kv, (S, N, hidden_size), jnp.float32)
    attn_mask = 0.1 * jax.random.normal(km, (L, S), jnp.float32)

    ref = _reference(params, query, key, value, attn_mask, n_head)

    # f32 compute path: tight validation of the kernel math
    out_f32 = sparse_attention_forward(params, query, key, value, attn_mask,
                                       n_head=n_head, compute_dtype=jnp.float32)
    out_f32 = jax.block_until_ready(out_f32)
    assert out_f32.shape == (L, N, hidden_size)
    assert jnp.allclose(out_f32, ref, atol=1e-4, rtol=1e-4)

    # default bf16 MXU path (bf16 exp on v6e/v7x): looser tolerance
    out_bf16 = sparse_attention_forward(params, query, key, value, attn_mask,
                                        n_head=n_head)
    out_bf16 = jax.block_until_ready(out_bf16)
    rel = jnp.linalg.norm(out_bf16 - ref) / jnp.linalg.norm(ref)
    assert float(rel) < 2.5e-2

    # no-mask branch (mask not streamed at all)
    ref_nm = _reference(params, query, key, value, None, n_head)
    out_nm = sparse_attention_forward(params, query, key, value, None,
                                      n_head=n_head, compute_dtype=jnp.float32)
    out_nm = jax.block_until_ready(out_nm)
    assert jnp.allclose(out_nm, ref_nm, atol=1e-4, rtol=1e-4)

    # boolean mask branch (True == masked out); exercises the finite-negative fill
    bool_mask = jax.random.uniform(kb, (L, S)) < 0.3
    bool_mask = bool_mask.at[:, 0].set(False)   # keep every query row attendable
    ref_bm = _reference(params, query, key, value, bool_mask, n_head)
    out_bm = sparse_attention_forward(params, query, key, value, bool_mask,
                                      n_head=n_head, compute_dtype=jnp.float32)
    out_bm = jax.block_until_ready(out_bm)
    assert jnp.allclose(out_bm, ref_bm, atol=1e-4, rtol=1e-4)

    print("KERNEL_OK")
</pallas_src>

<mosaic_0001>
module attributes {stable_mosaic.version = 11 : i64} {
  func.func @_linear_kernel(%arg0: i32, %arg1: i32, %arg2: i32, %arg3: memref<16x32xf32, #tpu.memory_space<vmem>>, %arg4: memref<32x32xf32, #tpu.memory_space<vmem>>, %arg5: memref<1x32xf32, #tpu.memory_space<vmem>>, %arg6: memref<16x32xf32, #tpu.memory_space<vmem>>, %arg7: memref<16x32xf32, #tpu.memory_space<vmem>>) attributes {dimension_semantics = [#tpu.dimension_semantics<parallel>, #tpu.dimension_semantics<parallel>, #tpu.dimension_semantics<arbitrary>], iteration_bounds = array<i64: 1, 1, 1>, scalar_prefetch = 0 : i64, scratch_operands = 1 : i64, tpu.core_type = #tpu.core_type<tc>, window_params = [{transform_indices = @transform_0, window_bounds = array<i64: 16, 32>}, {transform_indices = @transform_1, window_bounds = array<i64: 32, 32>}, {transform_indices = @transform_2, window_bounds = array<i64: 1, 32>}, {transform_indices = @transform_3, window_bounds = array<i64: 16, 32>}]} {
    %c0_i32 = arith.constant 0 : i32
    %0 = arith.cmpi eq, %arg2, %c0_i32 : i32
    %1 = arith.extui %0 : i1 to i32
    %c0_i32_0 = arith.constant 0 : i32
    %2 = arith.cmpi ne, %1, %c0_i32_0 : i32
    scf.if %2 {
      %cst_10 = arith.constant 0.000000e+00 : f32
      %12 = vector.broadcast %cst_10 : f32 to vector<16x32xf32>
      %c0_11 = arith.constant 0 : index
      %c0_12 = arith.constant 0 : index
      %13 = vector.load %arg7[%c0_11, %c0_12] : memref<16x32xf32, #tpu.memory_space<vmem>>, vector<16x32xf32>
      tpu.vector_store %arg7[%c0_11, %c0_12], %12 {strides = array<i32>} : memref<16x32xf32, #tpu.memory_space<vmem>>, vector<16x32xf32>,
    } else {
    }
    %c0 = arith.constant 0 : index
    %c0_1 = arith.constant 0 : index
    %3 = vector.load %arg3[%c0, %c0_1] : memref<16x32xf32, #tpu.memory_space<vmem>>, vector<16x32xf32>
    %c0_2 = arith.constant 0 : index
    %c0_3 = arith.constant 0 : index
    %4 = vector.load %arg7[%c0_2, %c0_3] : memref<16x32xf32, #tpu.memory_space<vmem>>, vector<16x32xf32>
    %c0_4 = arith.constant 0 : index
    %c0_5 = arith.constant 0 : index
    %5 = vector.load %arg4[%c0_4, %c0_5] : memref<32x32xf32, #tpu.memory_space<vmem>>, vector<32x32xf32>
    %cst = arith.constant dense<0.000000e+00> : vector<16x32xf32>
    %6 = tpu.matmul %3, %5, %cst {dimension_numbers = #tpu.dot_dimension_numbers<[1], [1], [0], [0], [0, 0, 1, 0], [], []>} : vector<16x32xf32>, vector<32x32xf32>, vector<16x32xf32> -> vector<16x32xf32>
    %7 = arith.addf %4, %6 : vector<16x32xf32>
    %c0_6 = arith.constant 0 : index
    %c0_7 = arith.constant 0 : index
    %8 = vector.load %arg7[%c0_6, %c0_7] : memref<16x32xf32, #tpu.memory_space<vmem>>, vector<16x32xf32>
    tpu.vector_store %arg7[%c0_6, %c0_7], %7 {strides = array<i32>} : memref<16x32xf32, #tpu.memory_space<vmem>>, vector<16x32xf32>,
    %c0_i32_8 = arith.constant 0 : i32
    %9 = arith.cmpi eq, %arg2, %c0_i32_8 : i32
    %10 = arith.extui %9 : i1 to i32
    %c0_i32_9 = arith.constant 0 : i32
    %11 = arith.cmpi ne, %10, %c0_i32_9 : i32
    scf.if %11 {
      %c0_10 = arith.constant 0 : index
      %c0_11 = arith.constant 0 : index
      %12 = vector.load %arg7[%c0_10, %c0_11] : memref<16x32xf32, #tpu.memory_space<vmem>>, vector<16x32xf32>
      %c0_12 = arith.constant 0 : index
      %c0_13 = arith.constant 0 : index
      %13 = vector.load %arg5[%c0_12, %c0_13] : memref<1x32xf32, #tpu.memory_space<vmem>>, vector<1x32xf32>
      %14 = vector.broadcast %13 : vector<1x32xf32> to vector<16x32xf32>
      %15 = arith.addf %12, %14 : vector<16x32xf32>
      %c0_14 = arith.constant 0 : index
      %c0_15 = arith.constant 0 : index
      %16 = vector.load %arg6[%c0_14, %c0_15] : memref<16x32xf32, #tpu.memory_space<vmem>>, vector<16x32xf32>
      tpu.vector_store %arg6[%c0_14, %c0_15], %15 {strides = array<i32>} : memref<16x32xf32, #tpu.memory_space<vmem>>, vector<16x32xf32>,
    } else {
    }
    return
  }
  func.func @transform_0(%arg0: i32, %arg1: i32, %arg2: i32) -> (i32, i32) {
    %c0_i32 = arith.constant 0 : i32
    return %arg0, %arg2 : i32, i32
  }
  func.func @transform_1(%arg0: i32, %arg1: i32, %arg2: i32) -> (i32, i32) {
    %c0_i32 = arith.constant 0 : i32
    return %arg1, %arg2 : i32, i32
  }
  func.func @transform_2(%arg0: i32, %arg1: i32, %arg2: i32) -> (i32, i32) {
    %c0_i32 = arith.constant 0 : i32
    %c0_i32_0 = arith.constant 0 : i32
    return %c0_i32, %arg1 : i32, i32
  }
  func.func @transform_3(%arg0: i32, %arg1: i32, %arg2: i32) -> (i32, i32) {
    %c0_i32 = arith.constant 0 : i32
    return %arg0, %arg1 : i32, i32
  }
}

</mosaic_0001>

<bundles_post_ra>
// kernel: tpu_custom_call.1
= control target key start
LH: loop header
LB: loop body
LE: loop exit
PB: predicated region body
PF: predicated region fallthrough
CT: control target
= control target key end

     0   :  { %8 = vsyncpa [#allocation4], 0  ;;  %s388_s0 = inlined_call_operand.hbm [shape: f32[16,32], index: 0, kind: input, shape index: {}]   ;;  %s389_s1 = inlined_call_operand.hbm [shape: f32[32,32], index: 1, kind: input, shape index: {}]   ;;  %s390_s2 = inlined_call_operand.vmem [shape: f32[1,32], index: 2, kind: input, shape index: {}]   ;;  %s391_s3 = inlined_call_operand.hbm [shape: f32[16,32], index: 3, kind: output, shape index: {}]  }
   0x1   :  { %9 = vsyncpa [#allocation7], 0 }
   0x2   :  { %10 = vsyncpa [#allocation5], 0  ;;  %s304_s12 = smov [#allocation3]   ;;  %s232_s16 = scalar_lea.hbm %s388_s0, 256 }
   0x3   :  { %s16_s13 = sshll.u32 %s304_s12, 4  ;;  %p233_p0 = scmp.ne.s32.totalorder %s388_s0, %s232_s16  ;;  %s17_s13 = int_to_ptr.vmem [resolvable:$true] %s16_s13 }
   0x4   :  { %p236_p1 = scmp.lt.u32.totalorder %s232_s16, %s388_s0 }
   0x6   :  { %p238_p2 = pnand %p236_p1, %p233_p0 }
   0x8   :  { %241 = shalt.err (!%p238_p2)
}
   0x9   :  { %s242_s21 = scalar_lea.vmem %s17_s13, 256  ;;  %p247_p4 = scmp.lt.s32.totalorder %s17_s13, %s17_s13 }
   0xa   :  { %p243_p3 = scmp.ne.s32.totalorder %s17_s13, %s242_s21  ;;  %p248_p5 = scmp.lt.s32.totalorder %s242_s21, %s242_s21 }
   0xc   :  { %p249_p6 = por %p248_p5, %p247_p4 }
   0xe   :  { %p250_p7 = pnand %p249_p6, %p243_p3 }
  0x10   :  { %253 = shalt.err (!%p250_p7)
}
  0x11   :  { %s305_s22 = smov 128   ;;  %s306_s23 = smov 8  }
  0x12   :  { %22 = dma.hbm_to_vmem [thread:$0]  %s388_s0, 256, %s17_s13, [#allocation4], %s305_s22, %s305_s22, %s306_s23  }
  0x13   :  { %s307_s26 = smov [#allocation6]   ;;  %s254_s30 = scalar_lea.hbm %s389_s1, 512 }
  0x14   :  { %s28_s27 = sshll.u32 %s307_s26, 4  ;;  %p255_p8 = scmp.ne.s32.totalorder %s389_s1, %s254_s30  ;;  %s29_s27 = int_to_ptr.vmem [resolvable:$true] %s28_s27 }
  0x15   :  { %p258_p9 = scmp.lt.u32.totalorder %s254_s30, %s389_s1 }
  0x17   :  { %p260_p10 = pnand %p258_p9, %p255_p8 }
  0x19   :  { %263 = shalt.err (!%p260_p10)
}
  0x1a   :  { %s264_s8 = scalar_lea.vmem %s29_s27, 512  ;;  %p269_p12 = scmp.lt.s32.totalorder %s29_s27, %s29_s27 }
  0x1b   :  { %p265_p11 = scmp.ne.s32.totalorder %s29_s27, %s264_s8  ;;  %p270_p13 = scmp.lt.s32.totalorder %s264_s8, %s264_s8 }
  0x1d   :  { %p271_p0 = por %p270_p13, %p269_p12 }
  0x1f   :  { %p272_p1 = pnand %p271_p0, %p265_p11 }
  0x21   :  { %275 = shalt.err (!%p272_p1)
}
  0x22   :  { %34 = dma.hbm_to_vmem [thread:$0]  %s389_s1, 512, %s29_s27, [#allocation7], %s305_s22, %s305_s22, %s306_s23  }
  0x23   :  { %298 = dma.done.wait [#allocation4], 256  }
  0x24   :  { %299 = vsyncadd [#allocation4], 4294967040 }
  0x25   :  { %300 = dma.done.wait [#allocation7], 512  }
  0x26   :  { %301 = vsyncadd [#allocation7], 4294966784  ;;  %vm47_vm0 = vcmask 261120   ;;  %v308_v0 = vmov 0.0   ;;  %v54_v1 = vld [vmem:[#allocation6] sm:$0xff]  ;;  %v55_v2 = vld [vmem:[#allocation6 + $0x8] sm:$0xff] }
  0x27   :  { %49 = vst.msk [vmem:[#allocation2 + $0x8] sm:$0xff] %vm47_vm0, %v308_v0  ;;  %48 = vst.msk [vmem:[#allocation2] sm:$0xff] %vm47_vm0, %v308_v0  ;;  %v56_v3 = vld [vmem:[#allocation6 + $0x10] sm:$0xff]  ;;  %v214_v4 = vpack.c.bf16 %v55_v2, %v54_v1  ;;  %v57_v5 = vld [vmem:[#allocation6 + $0x18] sm:$0xff]  ;;  %s309_s11 = smov [#allocation8]  }
  0x28   :  { %vm215_vm1 = vmpackc.low %vm47_vm0, %vm47_vm0  ;;  %v50_v6 = vld [vmem:[#allocation3] sm:$0xff]  ;;  %v220_v7 = vpack.c.bf16 %v57_v5, %v56_v3  ;;  %v51_v8 = vld [vmem:[#allocation3 + $0x8] sm:$0xff]  ;;  %s177_s12 = sshll.u32 %s309_s11, 4  ;;  %s178_s12 = int_to_ptr.vmem [resolvable:$true] %s177_s12 }
  0x29   :  { %211 = vmatprep.mubr.msk.f32.mxu0 %vm47_vm0, %v50_v6  ;;  %216 = vmatprep.subr.msk.bf16.mxu0 %vm215_vm1, %v214_v4  ;;  %v196_v15 = vld [vmem:[%s390_s2] ss:$0 sm:$0xff]  ;;  %s276_s13 = scalar_lea.vmem %s178_s12, 256  ;;  %p281_p3 = scmp.lt.s32.totalorder %s178_s12, %s178_s12 }
  0x2a   :  { %219 = vmatpush3.bf16.xpose.msk.msra.mxu0 %vm215_vm1, %v214_v4  ;;  %p277_p2 = scmp.ne.s32.totalorder %s178_s12, %s276_s13  ;;  %p282_p4 = scmp.lt.s32.totalorder %s276_s13, %s276_s13 }
  0x2b   :  { %222 = vmatprep.subr.msk.bf16.mxu0 %vm215_vm1, %v220_v7 }
  0x2c   :  { %p283_p5 = por %p282_p4, %p281_p3 }
  0x2e   :  { %v53_v9 = vld [vmem:[#allocation2 + $0x8] sm:$0xff]  ;;  %v52_v10 = vld [vmem:[#allocation2] sm:$0xff]  ;;  %p284_p6 = pnand %p283_p5, %p277_p2 }
  0x32   :  { %225 = vmatpush3.bf16.xpose.msk.msra.mxu0 %vm215_vm1, %v220_v7 }
  0x39   :  { %212 = vmatmul.mubr.msk.f32.vlgmr.msra.gmra.mrb[0].mxu0 %vm47_vm0, %v51_v8 }
 0x10c   :  { %v213_v11 = vpop.f32.mrb[0].mxu0 }
 0x10d   :  { %v153_v12 = vadd.f32 %v213_v11, %v53_v9  ;;  %v143_v13 = vpop.f32.mrb[1].mxu0 }
 0x10e   :  { %v152_v14 = vadd.f32 %v143_v13, %v52_v10 }
 0x10f   :  { %155 = vst.msk [vmem:[#allocation2 + $0x8] sm:$0xff] %vm47_vm0, %v153_v12 }
 0x110   :  { %154 = vst.msk [vmem:[#allocation2] sm:$0xff] %vm47_vm0, %v152_v14 }
 0x116   :  { %v160_v16 = vld [vmem:[#allocation2 + $0x8] sm:$0xff] }
 0x117   :  { %v159_v17 = vld [vmem:[#allocation2] sm:$0xff]  ;;  %v169_v18 = vadd.f32 %v196_v15, %v160_v16 }
 0x118   :  { %v168_v19 = vadd.f32 %v196_v15, %v159_v17 }
 0x119   :  { %171 = vst.msk [vmem:[#allocation8 + $0x8] sm:$0xff] %vm47_vm0, %v169_v18 }
 0x11a   :  { %170 = vst.msk [vmem:[#allocation8] sm:$0xff] %vm47_vm0, %v168_v19 }
 0x11b   :  { %287 = shalt.err (!%p284_p6)
}
 0x11c   :  { %s288_s15 = scalar_lea.hbm %s391_s3, 256 }
 0x11d   :  { %p289_p7 = scmp.ne.s32.totalorder %s391_s3, %s288_s15  ;;  %p292_p8 = scmp.lt.u32.totalorder %s288_s15, %s391_s3 }
 0x11f   :  { %p294_p9 = pnand %p292_p8, %p289_p7 }
 0x121   :  { %297 = shalt.err (!%p294_p9)
}
 0x122   :  { %183 = dma.vmem_to_hbm [thread:$0]  %s178_s12, 256, %s391_s3, [#allocation5], %s305_s22, %s305_s22, %s306_s23  }
 0x123   :  { %302 = dma.done.wait [#allocation5], 256  }
 0x124   :  { %303 = vsyncadd [#allocation5], 4294967040 }
 0x125   :  { %187 = vsyncpa [#allocation4], 1 }
 0x126   :  { %188 = vsyncpa [#allocation7], 1 }
 0x127   :  { %189 = vsyncpa [#allocation5], 1 }

</bundles_post_ra>
